<compile_context>
chip_gen: v6e
topology: v6e:2x2x1
jax: 0.10.0
libtpu: 0.0.40
codegen_flags: <defaults>
</compile_context>

<pallas_src>
import jax
import jax.numpy as jnp
from jax.experimental import pallas as pl
from jax.experimental.pallas import tpu as pltpu


def _var_dropout_kernel(mask_ref, x_ref, o_ref):
    # mask_ref: (1, 1, TH) f32, already scaled by 1/(1-p); x_ref/o_ref: (1, TS, TH).
    o_ref[...] = (x_ref[...] * mask_ref[...]).astype(o_ref.dtype)


def _pick_seq_tile(S, hidden_tile, itemsize, target_bytes=8 * 1024 * 1024):
    """Largest packing-native seq tile whose x tile stays under ~target_bytes.

    Rounding granularity is dtype-aware: 8 sublanes for 4-byte dtypes, 16 for
    2-byte (bf16/fp16), 32 for 1-byte (int8/fp8), so tiles stay sublane-packed
    and stores stay unmasked.
    """
    gran = max(8, 32 // max(1, itemsize))
    rows = max(gran, target_bytes // max(1, hidden_tile * itemsize))
    if S <= rows:
        return S  # full extent is always a legal block
    return max(gran, (min(rows, S) // gran) * gran)


def variational_dropout(x, key, p=0.1, training=True, *,
                        seq_tile=None, hidden_tile=None, donate_x=False):
    """JAX wrapper reproducing varDropout.forward semantics."""
    if not training:
        return x  # eval mode is identity, same as the PyTorch module

    if not (0.0 <= p < 1.0):
        raise ValueError(f"dropout probability must be in [0, 1), got {p}")

    B, S, H = x.shape
    dtype = x.dtype
    itemsize = jnp.dtype(dtype).itemsize

    # (B, 1, H) keep-mask shared across the sequence axis, with 1/(1-p) folded
    # in.  Kept in f32 so the scale is exact even for bf16 activations (the
    # in-kernel multiply upcasts; mask bandwidth is negligible).
    keep = jax.random.bernoulli(key, 1.0 - p, (B, 1, H))
    mask = jnp.where(keep, jnp.float32(1.0 / (1.0 - p)), jnp.float32(0.0))

    # Keep the output lane-dense: whole H per tile by default; if a caller
    # tiles H, require a multiple of 128 (clamp tiny values to full H).
    if hidden_tile is None or hidden_tile >= H:
        hidden_tile = H
    elif hidden_tile < 128:
        hidden_tile = H
    elif hidden_tile % 128 != 0:
        raise ValueError(
            f"hidden_tile must be a multiple of 128 (or the full H={H}), got {hidden_tile}")

    if seq_tile is None:
        seq_tile = _pick_seq_tile(S, hidden_tile, itemsize)

    grid = (B, pl.cdiv(H, hidden_tile), pl.cdiv(S, seq_tile))

    kwargs = {}
    if donate_x:
        # x is input index 1 (after mask), sole output index 0.
        kwargs["input_output_aliases"] = {1: 0}

    return pl.pallas_call(
        _var_dropout_kernel,
        out_shape=jax.ShapeDtypeStruct((B, S, H), dtype),
        grid=grid,
        in_specs=[
            pl.BlockSpec((1, 1, hidden_tile), lambda b, h, s: (b, 0, h)),          # mask
            pl.BlockSpec((1, seq_tile, hidden_tile), lambda b, h, s: (b, s, h)),   # x
        ],
        out_specs=pl.BlockSpec((1, seq_tile, hidden_tile), lambda b, h, s: (b, s, h)),
        compiler_params=pltpu.CompilerParams(
            # No reduction/accumulator anywhere -> every axis can be sharded
            # across TensorCores (v7x megacore); S stays innermost so the mask
            # tile is reused across the sequence loop.
            dimension_semantics=("parallel", "parallel", "parallel"),
            vmem_limit_bytes=48 * 1024 * 1024,
        ),
        cost_estimate=pl.CostEstimate(
            flops=B * S * H,
            transcendentals=0,
            bytes_accessed=(2 * B * S * H) * itemsize + B * H * 4,
        ),
        **kwargs,
    )(mask, x)


if __name__ == "__main__":
    B, S, H = 2, 8, 128   # (batch, seq_len, hidden); H=128 keeps blocks lane-dense
    p = 0.1

    key = jax.random.PRNGKey(0)
    xkey, mkey = jax.random.split(key)
    x = jax.random.normal(xkey, (B, S, H), dtype=jnp.float32)

    out = variational_dropout(x, mkey, p=p, training=True)
    out = jax.block_until_ready(out)

    # Sanity checks: every element is either dropped (0) or scaled by 1/(1-p),
    # and the drop pattern is identical along the sequence axis (variational).
    scaled = x / (1.0 - p)
    is_zero = jnp.isclose(out, 0.0)
    is_scaled = jnp.isclose(out, scaled, rtol=1e-5, atol=1e-5)
    assert bool(jnp.all(is_zero | is_scaled)), "output not in {0, x/(1-p)}"
    assert bool(jnp.all(is_zero == is_zero[:, 0:1, :])), "mask varies along seq axis"

    # bf16 path (exercises the f32-mask upcast + dtype-aware tiling).
    xb = x.astype(jnp.bfloat16)
    outb = jax.block_until_ready(variational_dropout(xb, mkey, p=p, training=True))
    assert outb.dtype == jnp.bfloat16
    zb = jnp.isclose(outb.astype(jnp.float32), 0.0)
    assert bool(jnp.all(zb == is_zero)), "bf16 path drops different elements"

    # Eval mode is identity (handled outside the kernel, like the module).
    assert bool(jnp.all(variational_dropout(x, mkey, p=p, training=False) == x))

    print("KERNEL_OK")
</pallas_src>

<mosaic_0001>
module attributes {stable_mosaic.version = 11 : i64} {
  func.func @_var_dropout_kernel(%arg0: i32, %arg1: i32, %arg2: i32, %arg3: memref<1x1x128xf32, #tpu.memory_space<vmem>>, %arg4: memref<1x8x128xf32, #tpu.memory_space<vmem>>, %arg5: memref<1x8x128xf32, #tpu.memory_space<vmem>>) attributes {dimension_semantics = [#tpu.dimension_semantics<parallel>, #tpu.dimension_semantics<parallel>, #tpu.dimension_semantics<parallel>], iteration_bounds = array<i64: 2, 1, 1>, scalar_prefetch = 0 : i64, scratch_operands = 0 : i64, tpu.core_type = #tpu.core_type<tc>, window_params = [{transform_indices = @transform_0, window_bounds = array<i64: 1, 1, 128>}, {transform_indices = @transform_1, window_bounds = array<i64: 1, 8, 128>}, {transform_indices = @transform_2, window_bounds = array<i64: 1, 8, 128>}]} {
    %c0 = arith.constant 0 : index
    %c0_0 = arith.constant 0 : index
    %c0_1 = arith.constant 0 : index
    %0 = vector.load %arg4[%c0, %c0_0, %c0_1] : memref<1x8x128xf32, #tpu.memory_space<vmem>>, vector<1x8x128xf32>
    %c0_2 = arith.constant 0 : index
    %c0_3 = arith.constant 0 : index
    %c0_4 = arith.constant 0 : index
    %1 = vector.load %arg3[%c0_2, %c0_3, %c0_4] : memref<1x1x128xf32, #tpu.memory_space<vmem>>, vector<1x1x128xf32>
    %2 = vector.broadcast %1 : vector<1x1x128xf32> to vector<1x8x128xf32>
    %3 = arith.mulf %0, %2 : vector<1x8x128xf32>
    %c0_5 = arith.constant 0 : index
    %c0_6 = arith.constant 0 : index
    %c0_7 = arith.constant 0 : index
    %4 = vector.load %arg5[%c0_5, %c0_6, %c0_7] : memref<1x8x128xf32, #tpu.memory_space<vmem>>, vector<1x8x128xf32>
    tpu.vector_store %arg5[%c0_5, %c0_6, %c0_7], %3 {strides = array<i32>} : memref<1x8x128xf32, #tpu.memory_space<vmem>>, vector<1x8x128xf32>,
    return
  }
  func.func @transform_0(%arg0: i32, %arg1: i32, %arg2: i32) -> (i32, i32, i32) {
    %c0_i32 = arith.constant 0 : i32
    %c0_i32_0 = arith.constant 0 : i32
    return %arg0, %c0_i32, %arg1 : i32, i32, i32
  }
  func.func @transform_1(%arg0: i32, %arg1: i32, %arg2: i32) -> (i32, i32, i32) {
    %c0_i32 = arith.constant 0 : i32
    return %arg0, %arg2, %arg1 : i32, i32, i32
  }
  func.func @transform_2(%arg0: i32, %arg1: i32, %arg2: i32) -> (i32, i32, i32) {
    %c0_i32 = arith.constant 0 : i32
    return %arg0, %arg2, %arg1 : i32, i32, i32
  }
}

</mosaic_0001>

<bundles_post_ra>
// kernel: tpu_custom_call.1
= control target key start
LH: loop header
LB: loop body
LE: loop exit
PB: predicated region body
PF: predicated region fallthrough
CT: control target
= control target key end

     0   :  { %7 = vsyncpa [#allocation3], 0  ;;  %s763_s0 = inlined_call_operand.hbm [shape: f32[2,1,128], index: 0, kind: input, shape index: {}]   ;;  %s764_s1 = inlined_call_operand.hbm [shape: f32[2,8,128], index: 1, kind: input, shape index: {}]   ;;  %s765_s2 = inlined_call_operand.hbm [shape: f32[2,8,128], index: 2, kind: output, shape index: {}]  }
   0x1   :  { %9 = vsyncpa [#allocation3 + $0x1], 0 }
   0x2   :  { %10 = vsyncpa [#allocation6], 0 }
   0x3   :  { %12 = vsyncpa [#allocation6 + $0x1], 0 }
   0x4   :  { %13 = vsyncpa [#allocation4], 0 }
   0x5   :  { %15 = vsyncpa [#allocation4 + $0x1], 0  ;;  %s599_s9 = smov 0   ;;  %s601_s10 = smov 0  }
   0x6   :  { %s603_s11 = smov 0   ;;  %s605_s12 = smov 0  }
   0x7   :  { %s607_s13 = smov 0   ;;  %s609_s14 = smov 0  }
   0x8 LB: > { %s357_s15 = sadd.s32 4294967295, %s579_s14   ;;  %s358_s16 = sadd.s32 4294967294, %s579_s14   ;;  %s579_s14 = sphi %s609_s14, %s21_s14   ;;  %s575_s13 = sphi %s607_s13, %s777_s13   ;;  %s571_s12 = sphi %s605_s12, %s776_s12   ;;  %s567_s11 = sphi %s603_s11, %s775_s11   ;;  %s563_s10 = sphi %s601_s10, %s774_s10   ;;  %s559_s9 = sphi %s599_s9, %s773_s9  }
   0x9   : > { %s40_s17 = sadd.s32 1, %s575_s13  ;;  %s49_s18 = sadd.s32 1, %s567_s11 }
   0xa   : > { %p42_p0 = scmp.ge.s32.totalorder %s40_s17, 2  ;;  %p56_p1 = scmp.ne.s32.totalorder %s567_s11, %s563_s10 }
   0xb   : > { %p57_p2 = scmp.eq.s32.totalorder %s579_s14, 0  ;;  %p62_p3 = scmp.ne.s32.totalorder %s563_s10, %s559_s9 }
   0xc   : > { %s779_s17 = smov (%p42_p0, %s40_s17), 0  ;;  %p63_p5 = scmp.eq.s32.totalorder %s357_s15, 0 }
   0xd   : > { %p640_p4 = por %p57_p2, %p56_p1  ;;  %s44_s20 = ssub.s32 %s575_s13, %s779_s17 }
   0xe   : > { %p120_p6 = scmp.eq.s32.totalorder %s357_s15, 1  ;;  %p47_p7 = scmp.eq.s32.totalorder %s44_s20, 0 }
   0xf   : > { %p646_p8 = por %p63_p5, %p62_p3  ;;  %p126_p10 = scmp.eq.s32.totalorder %s358_s16, 1 }
  0x10   : > { %p650_p9 = por %p120_p6, %p56_p1  ;;  %p389_p13 = scmp.lt.s32.totalorder %s579_s14, 2 }
  0x11   : > { %s655_s23 = scalar_select %p47_p7, %s567_s11, %s49_s18  }
  0x12   : > { %p657_p11 = por %p126_p10, %p62_p3  ;;  %s664_s25 = sand.u32 1, %s567_s11  }
  0x13   : > { %s361_s26 = sshll.u32 %s575_s13, 4  ;;  %s149_s27 = scalar_lea.vmem [#allocation2], %s664_s25 }
  0x14   : > { %s157_s28 = sshll.u32 %s149_s27, 4  ;;  %s155_s3 = scalar_lea.hbm %s763_s0, %s361_s26  ;;  %s158_s28 = int_to_ptr.vmem [resolvable:$true] %s157_s28 }
  0x15   : > { %p673_p0 = pnand %p389_p13, %p640_p4  ;;  %p364_p1 = scmp.ge.s32.totalorder %s579_s14, 1 }
  0x16   : > { %p182_p2 = scmp.lt.s32.totalorder %s579_s14, 3  ;;  %s362_s5 = sshll.u32 %s664_s25, 3 }
  0x17   : > { %s147_s6 = scalar_lea.sflag [#allocation3], %s664_s25  ;;  %p441_p3 = pneg %p673_p0 }
  0x18   : > { %s452_s7 = scalar_lea.vmem %s158_s28, 16  ;;  %s581_s8 = smov [#allocation2]  }
  0x19   : > { %p453_p5 = scmp.ne.s32.totalorder %s158_s28, %s452_s7  ;;  %s457_s15 = sshll.u32 %s581_s8, 4  ;;  %s458_s15 = int_to_ptr.vmem [resolvable:$false] %s457_s15 }
  0x1a   : > { %s459_s16 = scalar_lea.vmem %s458_s15, 32  ;;  %p460_p4 = scmp.lt.s32.totalorder %s158_s28, %s458_s15 }
  0x1b   : > { %p455_p6 = pnand %p453_p5, %p441_p3  ;;  %p461_p10 = scmp.lt.s32.totalorder %s459_s16, %s452_s7 }
  0x1d   : > { %p456_p7 = pneg %p455_p6  ;;  %p462_p13 = por %p461_p10, %p460_p4 }
  0x1f   : > { %p463_p12 = pnand %p462_p13, %p456_p7 }
  0x21   : > { %466 = shalt.err (!%p463_p12)
}
  0x22   : > { %381 = dma.hbm_to_vmem [thread:$0]  (!%p673_p0), %s155_s3, 16, %s158_s28, %s147_s6  }
  0x23   : > { %p692_p5 = pnand %p364_p1, %p182_p2  ;;  %s363_s19 = sshll.u32 %s575_s13, 7 }
  0x24   : > { %s168_s20 = scalar_lea.vmem [#allocation5], %s362_s5  ;;  %s175_s30 = scalar_lea.hbm %s764_s1, %s363_s19 }
  0x25   : > { %s177_s26 = sshll.u32 %s168_s20, 4  ;;  %s165_s7 = scalar_lea.sflag [#allocation6], %s664_s25  ;;  %s178_s26 = int_to_ptr.vmem [resolvable:$true] %s177_s26 }
  0x26   : > { %s480_s8 = scalar_lea.vmem %s178_s26, 128  ;;  %s582_s28 = smov [#allocation5]  }
  0x27   : > { %p481_p12 = scmp.ne.s32.totalorder %s178_s26, %s480_s8  ;;  %s485_s3 = sshll.u32 %s582_s28, 4  ;;  %s486_s3 = int_to_ptr.vmem [resolvable:$false] %s485_s3 }
  0x28   : > { %s487_s6 = scalar_lea.vmem %s486_s3, 256  ;;  %p488_p1 = scmp.lt.s32.totalorder %s178_s26, %s486_s3 }
  0x29   : > { %p483_p6 = pnand %p481_p12, %p441_p3  ;;  %p489_p2 = scmp.lt.s32.totalorder %s487_s6, %s480_s8 }
  0x2b   : > { %p484_p7 = pneg %p483_p6  ;;  %p490_p4 = por %p489_p2, %p488_p1 }
  0x2d   : > { %p491_p10 = pnand %p490_p4, %p484_p7 }
  0x2f   : > { %494 = shalt.err (!%p491_p10)
}
  0x30   : > { %384 = dma.hbm_to_vmem [thread:$0]  (!%p673_p0), %s175_s30, 128, %s178_s26, %s165_s7  }
  0x31   : > { %186 = sbr.rel (%p692_p5) target bundleno = 82 (0x52), region = 28  ;;  %s709_s25 = sand.u32 (!%p692_p5), 1, %s563_s10  }
  0x32   : > { %s189_s5 = scalar_lea.sflag (!%p692_p5), [#allocation3], %s709_s25  ;;  %s191_s15 = scalar_lea.vmem (!%p692_p5), [#allocation2], %s709_s25 }
  0x36   : > { %546 = dma.done.wait (%p646_p8), %s189_s5, 16  }
  0x37   : > { %548 = vsyncadd (%p646_p8), %s189_s5, 4294967280  ;;  %s365_s4 = sshll.u32 %s709_s25, 3  ;;  %s197_s16 = scalar_lea.sflag [#allocation6], %s709_s25 }
  0x38   : > { %s200_s18 = scalar_lea.vmem [#allocation5], %s365_s4 }
  0x39   : > { %550 = dma.done.wait (%p646_p8), %s197_s16, 128  }
  0x3a   : > { %552 = vsyncadd (%p646_p8), %s197_s16, 4294967168  ;;  %s224_s19 = scalar_lea.vmem [#allocation7], %s365_s4  ;;  %s369_s26 = sshll.u32 %s571_s12, 7  ;;  %v225_v0 = vld [vmem:[%s200_s18] sm:$0xff]  ;;  %v367_v1 = vld [vmem:[%s191_s15] ss:$0 sm:$0xff] }
  0x3b   : > { %s251_s20 = sshll.u32 %s224_s19, 4  ;;  %v233_v2 = vmul.f32 %v367_v1, %v225_v0  ;;  %s249_s30 = scalar_lea.hbm %s765_s2, %s369_s26  ;;  %s252_s20 = int_to_ptr.vmem [resolvable:$true] %s251_s20 }
  0x3c   : > { %s236_s7 = scalar_lea.sflag [#allocation4], %s709_s25  ;;  %s495_s8 = scalar_lea.vmem %s252_s20, 128 }
  0x3d   : > { %234 = vst [vmem:[%s224_s19] sm:$0xff] %v233_v2  ;;  %p496_p0 = scmp.ne.s32.totalorder %s252_s20, %s495_s8  ;;  %s583_s21 = smov [#allocation7]  }
  0x3e   : > { %s499_s28 = sshll.u32 %s583_s21, 4  ;;  %s500_s28 = int_to_ptr.vmem [resolvable:$false] %s499_s28 }
  0x3f   : > { %p497_p8 = pnand %p496_p0, %p650_p9  ;;  %s501_s3 = scalar_lea.vmem %s500_s28, 256 }
  0x40   : > { %p502_p13 = scmp.lt.s32.totalorder %s252_s20, %s500_s28  ;;  %p503_p5 = scmp.lt.s32.totalorder %s501_s3, %s495_s8 }
  0x41   : > { %p498_p3 = pneg %p497_p8 }
  0x42   : > { %p504_p12 = por %p503_p5, %p502_p13 }
  0x44   : > { %p505_p6 = pnand %p504_p12, %p498_p3 }
  0x46   : > { %508 = shalt.err (!%p505_p6)
}
  0x47   : > { %s509_s12 = scalar_lea.hbm %s249_s30, 128  ;;  %s513_s5 = scalar_lea.hbm %s765_s2, 256 }
  0x48   : > { %p510_p7 = scmp.ne.s32.totalorder %s249_s30, %s509_s12  ;;  %p514_p4 = scmp.lt.s32.totalorder %s249_s30, %s765_s2 }
  0x49   : > { %p515_p10 = scmp.lt.s32.totalorder %s513_s5, %s509_s12 }
  0x4a   : > { %p511_p1 = pnand %p510_p7, %p650_p9 }
  0x4b   : > { %p516_p0 = por %p515_p10, %p514_p4 }
  0x4c   : > { %p512_p2 = pneg %p511_p1 }
  0x4e   : > { %p517_p8 = pnand %p516_p0, %p512_p2 }
  0x50   : > { %520 = shalt.err (!%p517_p8)
}
  0x51   : > { %376 = dma.vmem_to_hbm [thread:$0]  (%p650_p9), %s252_s20, 128, %s249_s30, %s236_s7  }
  0x52 PF: > { %s263_s16 = sand.u32 1, %s559_s9   ;;  %p772_p3 = scmp.ge.s32.totalorder %s579_s14, 2 }
  0x53   : > { %s264_s18 = scalar_lea.sflag [#allocation4], %s263_s16 }
  0x54   : > { %p386_p13 = pnand %p772_p3, %p657_p11 }
  0x56   : > { %p387_p5 = pneg %p386_p13 }
  0x58   : > { %554 = dma.done.wait (%p387_p5), %s264_s18, 128  }
  0x59   : > { %556 = vsyncadd (%p387_p5), %s264_s18, 4294967168  ;;  %s21_s14 = sadd.s32 1, %s579_s14   ;;  %s773_s9 = smov %s563_s10 }
  0x5a   : > { %p18_p12 = scmp.ge.s32.totalorder %s21_s14, 4   ;;  %s774_s10 = smov %s567_s11 }
  0x5b   : > { %s775_s11 = smov %s655_s23  ;;  %s776_s12 = smov %s575_s13 }
  0x5c   : > { %s777_s13 = smov %s779_s17  ;;  %20 = sbr.rel (!%p18_p12) target bundleno = 8 (0x8), region = 86 }
  0x61   :  { %269 = vsyncpa [#allocation3], 1 }
  0x62   :  { %271 = vsyncpa [#allocation3 + $0x1], 1 }
  0x63   :  { %272 = vsyncpa [#allocation6], 1 }
  0x64   :  { %274 = vsyncpa [#allocation6 + $0x1], 1 }
  0x65   :  { %275 = vsyncpa [#allocation4], 1 }
  0x66   :  { %277 = vsyncpa [#allocation4 + $0x1], 1 }

</bundles_post_ra>
